<compile_context>
chip_gen: v5e
topology: v5e:2x2
jax: 0.10.0
libtpu: 0.0.40
codegen_flags: <defaults>
</compile_context>

<pallas_src>
import math

import jax
import jax.numpy as jnp
from jax.experimental import pallas as pl
from jax.experimental.pallas import tpu as pltpu


# --------------------------------------------------------------------------- #
# Kernel
# --------------------------------------------------------------------------- #
def _patch_embed_kernel(x_ref, w_ref, pe_ref, o_ref):
    """One row-tile of the fused Linear + positional-encoding op.

    x_ref  : (Tm, D_in)  input patch rows (native dtype; cast here, post-DMA)
    w_ref  : (D_in, E)   weight, pre-transposed in the wrapper (lane dim = E)
    pe_ref : (Tm, E)     precomputed (PE + bias) rows, f32
    o_ref  : (Tm, E)     output rows (f32 or bf16)
    """
    x = x_ref[...].astype(w_ref.dtype)  # in-VMEM cast, no extra HBM traffic
    y = jnp.dot(x, w_ref[...], preferred_element_type=jnp.float32)
    o_ref[...] = (y + pe_ref[...]).astype(o_ref.dtype)


# --------------------------------------------------------------------------- #
# Helpers
# --------------------------------------------------------------------------- #
def _positional_encoding(S, E):
    """Sinusoidal PE exactly as the PyTorch module computes it:
    even_i = arange(0, E, 2); divisor = 10000 ** (2 * even_i / E);
    sin/cos interleaved via stack(..., -1).flatten(-2, -1)."""
    position = jnp.arange(S, dtype=jnp.float32).reshape(S, 1)      # (S, 1)
    even_i = jnp.arange(0, E, 2, dtype=jnp.float32)                # 0,2,4,...
    pow_ = jnp.power(10000.0, 2.0 * even_i / E)                    # (E//2,)
    pe_sin = jnp.sin(position / pow_)                              # (S, E//2)
    pe_cos = jnp.cos(position / pow_)                              # (S, E//2)
    return jnp.stack([pe_sin, pe_cos], axis=-1).reshape(S, E)      # interleaved


def _vmem_limit_bytes():
    """Generation-aware VMEM ceiling (75% of per-core physical, capped 96 MiB)."""
    cap = None
    try:
        cap = getattr(pltpu.get_tpu_info(), "vmem_capacity_bytes", None)
    except Exception:
        cap = None
    if not cap:
        cap = 64 * 1024 * 1024            # conservative fallback (v7x per-TC)
    # ~96 MiB on v5e/v6e (128 MiB physical), ~48 MiB per TC on v7x (64 MiB).
    return min(int(cap) * 3 // 4, 96 * 1024 * 1024)


def _choose_row_tile(M, row_bytes, budget_bytes, batch, min_grid_steps=4):
    """Largest multiple-of-8 divisor of M whose double-buffered x/out/PE blocks
    fit `budget_bytes`, while keeping >= min_grid_steps grid steps so both v7x
    TensorCores get work and the double-buffer pipeline has steps to overlap.
    Falls back to a full-extent block (always layout-legal) if M has no
    suitable divisor."""
    cands = [d for d in range(8, M + 1, 8) if M % d == 0]
    if not cands or cands[-1] != M:
        cands.append(M)
    fitting = [d for d in cands if 2 * d * row_bytes <= budget_bytes]
    if not fitting:
        return cands[0]
    good = [d for d in fitting if batch * (M // d) >= min_grid_steps]
    return max(good) if good else max(fitting)


# --------------------------------------------------------------------------- #
# Wrapper
# --------------------------------------------------------------------------- #
def patch_embedding(x, weight, bias, *, compute_dtype=jnp.float32,
                    out_dtype=None, pad_embed_lanes=True):
    """Fused patch embedding.

    x      : (B, S, N, D_in)   weight : (E, D_in) [PyTorch layout]   bias : (E,)
    Returns (B, S, N, E), dtype `out_dtype` (bf16 when compute is bf16, else f32).
    """
    B, S, N, D_in = x.shape
    E = weight.shape[0]
    assert E % 2 == 0, "embed_dim must be even (sin/cos pairs)"

    if out_dtype is None:
        out_dtype = (jnp.bfloat16
                     if jnp.dtype(compute_dtype) == jnp.dtype(jnp.bfloat16)
                     else jnp.float32)

    # Lane-dense output: pad E to a 128-multiple (no-op for production shapes).
    E_k = E
    if pad_embed_lanes and E % 128 != 0:
        E_k = ((E + 127) // 128) * 128

    # One-time weight transpose to (D_in, E_k): kernel contracts dim 0, weight
    # lane dim becomes E (DMA/lane-dense), no per-step XLU transpose.
    w_t = weight.astype(compute_dtype).T                       # (D_in, E)
    if E_k != E:
        w_t = jnp.pad(w_t, ((0, 0), (0, E_k - E)))

    # Precompute (PE + bias) once, expanded to a per-row (S*N, E_k) f32 table.
    pe = _positional_encoding(S, E) + bias.astype(jnp.float32)[None, :]
    if E_k != E:
        pe = jnp.pad(pe, ((0, 0), (0, E_k - E)))
    pe_flat = jnp.repeat(pe, N, axis=0)                        # (S*N, E_k)

    # Flatten patches in the wrapper (metadata-only); kernel stays 2-D.
    M = S * N
    x_flat = x.reshape(B, M, D_in)

    # Size the row tile against the generation-aware VMEM budget.
    vmem_limit = _vmem_limit_bytes()
    x_isz = jnp.dtype(x.dtype).itemsize
    c_isz = jnp.dtype(compute_dtype).itemsize
    o_isz = jnp.dtype(out_dtype).itemsize
    w_bytes = D_in * E_k * c_isz
    row_bytes = D_in * x_isz + E_k * o_isz + E_k * 4           # x + out + PE
    headroom = 4 * 1024 * 1024
    block_budget = max(vmem_limit - 2 * w_bytes - headroom, 1 << 20)
    Tm = _choose_row_tile(M, row_bytes, block_budget, B)
    grid = (M // Tm, B)   # batch innermost -> PE / weight blocks not re-fetched

    def call(single_buffer_weight):
        w_kwargs = ({"pipeline_mode": pl.Buffered(1)}
                    if single_buffer_weight else {})
        return pl.pallas_call(
            _patch_embed_kernel,
            out_shape=jax.ShapeDtypeStruct((B, M, E_k), out_dtype),
            grid_spec=pltpu.PrefetchScalarGridSpec(
                num_scalar_prefetch=0,
                grid=grid,
                in_specs=[
                    pl.BlockSpec((None, Tm, D_in), lambda t, b: (b, t, 0)),
                    pl.BlockSpec((D_in, E_k), lambda t, b: (0, 0), **w_kwargs),
                    pl.BlockSpec((Tm, E_k), lambda t, b: (t, 0)),
                ],
                out_specs=pl.BlockSpec((None, Tm, E_k), lambda t, b: (b, t, 0)),
            ),
            compiler_params=pltpu.CompilerParams(
                dimension_semantics=("parallel", "parallel"),
                vmem_limit_bytes=int(vmem_limit),
            ),
        )(x_flat, w_t, pe_flat)

    try:
        out_flat = call(True)    # grid-invariant weight -> single buffer
    except Exception:
        out_flat = call(False)   # fallback if this jax rejects Buffered(1)

    out = out_flat.reshape(B, S, N, E_k)
    if E_k != E:
        out = out[..., :E]
    return out


# --------------------------------------------------------------------------- #
# Reference (mirrors the PyTorch forward line-by-line)
# --------------------------------------------------------------------------- #
def _reference(x, weight, bias):
    # TODO(synk): validate this PE convention once against the real torch module.
    y = jnp.einsum("bsnd,ed->bsne", x, weight,
                   precision=jax.lax.Precision.HIGHEST) + bias
    S, E = y.shape[1], y.shape[-1]
    pe = _positional_encoding(S, E)[:, None, :]   # (S, 1, E), as in the module
    return y + pe


# --------------------------------------------------------------------------- #
# Demo / self-test
# --------------------------------------------------------------------------- #
if __name__ == "__main__":
    B, S, N = 2, 8, 4                       # batch, frames, patches per frame
    INPUT_DIM, EMBED_DIM = 16, 32

    key = jax.random.PRNGKey(0)
    kx, kw, kb = jax.random.split(key, 3)

    x = jax.random.normal(kx, (B, S, N, INPUT_DIM), dtype=jnp.float32)
    bound = 1.0 / math.sqrt(INPUT_DIM)      # nn.Linear-style init
    weight = jax.random.uniform(kw, (EMBED_DIM, INPUT_DIM), jnp.float32, -bound, bound)
    bias = jax.random.uniform(kb, (EMBED_DIM,), jnp.float32, -bound, bound)

    ref = _reference(x, weight, bias)

    # 1) f32 compute, lane-padded (default) output path.
    out = jax.block_until_ready(patch_embedding(x, weight, bias))
    assert out.shape == (B, S, N, EMBED_DIM)
    assert jnp.allclose(out, ref, atol=1e-4, rtol=1e-4), "f32 (padded) mismatch"

    # 2) f32 compute, unpadded (masked-store) output path.
    out_np = jax.block_until_ready(
        patch_embedding(x, weight, bias, pad_embed_lanes=False))
    assert jnp.allclose(out_np, ref, atol=1e-4, rtol=1e-4), "f32 (unpadded) mismatch"

    # 3) bf16 compute + bf16 output (MXU-native; halves the output writeback).
    out_bf = jax.block_until_ready(
        patch_embedding(x, weight, bias, compute_dtype=jnp.bfloat16))
    assert out_bf.dtype == jnp.bfloat16
    ref_bf = _reference(x.astype(jnp.bfloat16).astype(jnp.float32),
                        weight.astype(jnp.bfloat16).astype(jnp.float32), bias)
    assert jnp.allclose(out_bf.astype(jnp.float32), ref_bf,
                        atol=3e-2, rtol=3e-2), "bf16 mismatch"

    # 4) Production-like lane-dense shape (E multiple of 128 -> no padding path).
    B2, S2, N2, D2, E2 = 2, 8, 8, 32, 128
    x2 = jax.random.normal(jax.random.PRNGKey(1), (B2, S2, N2, D2), jnp.float32)
    w2 = jax.random.uniform(jax.random.PRNGKey(2), (E2, D2), jnp.float32, -0.1, 0.1)
    b2 = jax.random.uniform(jax.random.PRNGKey(3), (E2,), jnp.float32, -0.1, 0.1)
    out2 = jax.block_until_ready(patch_embedding(x2, w2, b2))
    assert jnp.allclose(out2, _reference(x2, w2, b2), atol=1e-4, rtol=1e-4), \
        "lane-dense f32 mismatch"

    print("KERNEL_OK")
</pallas_src>

<mosaic_0001>
module attributes {stable_mosaic.version = 11 : i64} {
  func.func @_patch_embed_kernel(%arg0: i32, %arg1: i32, %arg2: memref<1x16x16xf32, #tpu.memory_space<vmem>>, %arg3: memref<16x128xf32, #tpu.memory_space<vmem>>, %arg4: memref<16x128xf32, #tpu.memory_space<vmem>>, %arg5: memref<1x16x128xf32, #tpu.memory_space<vmem>>) attributes {dimension_semantics = [#tpu.dimension_semantics<parallel>, #tpu.dimension_semantics<parallel>], iteration_bounds = array<i64: 2, 2>, scalar_prefetch = 0 : i64, scratch_operands = 0 : i64, tpu.core_type = #tpu.core_type<tc>, window_params = [{transform_indices = @transform_0, window_bounds = array<i64: 1, 16, 16>}, {pipeline_mode = #tpu.pipeline_mode<synchronous>, transform_indices = @transform_1, window_bounds = array<i64: 16, 128>}, {transform_indices = @transform_2, window_bounds = array<i64: 16, 128>}, {transform_indices = @transform_3, window_bounds = array<i64: 1, 16, 128>}]} {
    %c0 = arith.constant 0 : index
    %c0_0 = arith.constant 0 : index
    %c0_1 = arith.constant 0 : index
    %0 = vector.load %arg2[%c0, %c0_0, %c0_1] : memref<1x16x16xf32, #tpu.memory_space<vmem>>, vector<1x16x16xf32>
    %1 = vector.shape_cast %0 : vector<1x16x16xf32> to vector<16x16xf32>
    %c0_2 = arith.constant 0 : index
    %c0_3 = arith.constant 0 : index
    %2 = vector.load %arg3[%c0_2, %c0_3] : memref<16x128xf32, #tpu.memory_space<vmem>>, vector<16x128xf32>
    %cst = arith.constant dense<0.000000e+00> : vector<16x128xf32>
    %3 = tpu.matmul %1, %2, %cst {dimension_numbers = #tpu.dot_dimension_numbers<[1], [0], [0], [1], [0, 0, 1, 1], [], []>} : vector<16x16xf32>, vector<16x128xf32>, vector<16x128xf32> -> vector<16x128xf32>
    %c0_4 = arith.constant 0 : index
    %c0_5 = arith.constant 0 : index
    %4 = vector.load %arg4[%c0_4, %c0_5] : memref<16x128xf32, #tpu.memory_space<vmem>>, vector<16x128xf32>
    %5 = arith.addf %3, %4 : vector<16x128xf32>
    %c0_6 = arith.constant 0 : index
    %c0_7 = arith.constant 0 : index
    %c0_8 = arith.constant 0 : index
    %6 = vector.load %arg5[%c0_6, %c0_7, %c0_8] : memref<1x16x128xf32, #tpu.memory_space<vmem>>, vector<1x16x128xf32>
    %7 = vector.shape_cast %6 : vector<1x16x128xf32> to vector<16x128xf32>
    %8 = vector.shape_cast %5 : vector<16x128xf32> to vector<1x16x128xf32>
    tpu.vector_store %arg5[%c0_6, %c0_7, %c0_8], %8 {strides = array<i32>} : memref<1x16x128xf32, #tpu.memory_space<vmem>>, vector<1x16x128xf32>,
    return
  }
  func.func @transform_0(%arg0: i32, %arg1: i32) -> (i32, i32, i32) {
    %c0_i32 = arith.constant 0 : i32
    %c0_i32_0 = arith.constant 0 : i32
    return %arg1, %arg0, %c0_i32 : i32, i32, i32
  }
  func.func @transform_1(%arg0: i32, %arg1: i32) -> (i32, i32) {
    %c0_i32 = arith.constant 0 : i32
    %c0_i32_0 = arith.constant 0 : i32
    %c0_i32_1 = arith.constant 0 : i32
    return %c0_i32, %c0_i32_0 : i32, i32
  }
  func.func @transform_2(%arg0: i32, %arg1: i32) -> (i32, i32) {
    %c0_i32 = arith.constant 0 : i32
    %c0_i32_0 = arith.constant 0 : i32
    return %arg0, %c0_i32 : i32, i32
  }
  func.func @transform_3(%arg0: i32, %arg1: i32) -> (i32, i32, i32) {
    %c0_i32 = arith.constant 0 : i32
    %c0_i32_0 = arith.constant 0 : i32
    return %arg1, %arg0, %c0_i32 : i32, i32, i32
  }
}

module attributes {stable_mosaic.version = 11 : i64} {
  func.func @_patch_embed_kernel(%arg0: i32, %arg1: i32, %arg2: memref<1x16x16xf32, #tpu.memory_space<vmem>>, %arg3: memref<16x128xf32, #tpu.memory_space<vmem>>, %arg4: memref<16x128xf32, #tpu.memory_space<vmem>>, %arg5: memref<1x16x128xf32, #tpu.memory_space<vmem>>) attributes {dimension_semantics = [#tpu.dimension_semantics<parallel>, #tpu.dimension_semantics<parallel>], iteration_bounds = array<i64: 2, 2>, scalar_prefetch = 0 : i64, scratch_operands = 0 : i64, tpu.core_type = #tpu.core_type<tc>, window_params = [{transform_indices = @transform_0, window_bounds = array<i64: 1, 16, 16>}, {pipeline_mode = #tpu.pipeline_mode<synchronous>, transform_indices = @transform_1, window_bounds = array<i64: 16, 128>}, {transform_indices = @transform_2, window_bounds = array<i64: 16, 128>}, {transform_indices = @transform_3, window_bounds = array<i64: 1, 16, 128>}]} {
    %c0 = arith.constant 0 : index
    %c0_0 = arith.constant 0 : index
    %c0_1 = arith.constant 0 : index
    %0 = vector.load %arg2[%c0, %c0_0, %c0_1] : memref<1x16x16xf32, #tpu.memory_space<vmem>>, vector<1x16x16xf32>
    %1 = vector.shape_cast %0 : vector<1x16x16xf32> to vector<16x16xf32>
    %c0_2 = arith.constant 0 : index
    %c0_3 = arith.constant 0 : index
    %2 = vector.load %arg3[%c0_2, %c0_3] : memref<16x128xf32, #tpu.memory_space<vmem>>, vector<16x128xf32>
    %cst = arith.constant dense<0.000000e+00> : vector<16x128xf32>
    %3 = tpu.matmul %1, %2, %cst {dimension_numbers = #tpu.dot_dimension_numbers<[1], [0], [0], [1], [0, 0, 1, 1], [], []>} : vector<16x16xf32>, vector<16x128xf32>, vector<16x128xf32> -> vector<16x128xf32>
    %c0_4 = arith.constant 0 : index
    %c0_5 = arith.constant 0 : index
    %4 = vector.load %arg4[%c0_4, %c0_5] : memref<16x128xf32, #tpu.memory_space<vmem>>, vector<16x128xf32>
    %5 = arith.addf %3, %4 : vector<16x128xf32>
    %c0_6 = arith.constant 0 : index
    %c0_7 = arith.constant 0 : index
    %c0_8 = arith.constant 0 : index
    %6 = vector.load %arg5[%c0_6, %c0_7, %c0_8] : memref<1x16x128xf32, #tpu.memory_space<vmem>>, vector<1x16x128xf32>
    %7 = vector.shape_cast %6 : vector<1x16x128xf32> to vector<16x128xf32>
    %8 = vector.shape_cast %5 : vector<16x128xf32> to vector<1x16x128xf32>
    tpu.vector_store %arg5[%c0_6, %c0_7, %c0_8], %8 {strides = array<i32>} : memref<1x16x128xf32, #tpu.memory_space<vmem>>, vector<1x16x128xf32>,
    return
  }
  func.func @transform_0(%arg0: i32, %arg1: i32) -> (i32, i32, i32) {
    %c0_i32 = arith.constant 0 : i32
    %c0_i32_0 = arith.constant 0 : i32
    return %arg1, %arg0, %c0_i32 : i32, i32, i32
  }
  func.func @transform_1(%arg0: i32, %arg1: i32) -> (i32, i32) {
    %c0_i32 = arith.constant 0 : i32
    %c0_i32_0 = arith.constant 0 : i32
    %c0_i32_1 = arith.constant 0 : i32
    return %c0_i32, %c0_i32_0 : i32, i32
  }
  func.func @transform_2(%arg0: i32, %arg1: i32) -> (i32, i32) {
    %c0_i32 = arith.constant 0 : i32
    %c0_i32_0 = arith.constant 0 : i32
    return %arg0, %c0_i32 : i32, i32
  }
  func.func @transform_3(%arg0: i32, %arg1: i32) -> (i32, i32, i32) {
    %c0_i32 = arith.constant 0 : i32
    %c0_i32_0 = arith.constant 0 : i32
    return %arg1, %arg0, %c0_i32 : i32, i32, i32
  }
}

</mosaic_0001>

<bundles_post_ra>
// kernel: tpu_custom_call.1
= control target key start
LH: loop header
LB: loop body
LE: loop exit
PB: predicated region body
PF: predicated region fallthrough
CT: control target
= control target key end

     0   :  { %s713_s0 = inlined_call_operand.vmem [shape: f32[2,32,16], index: 0, kind: input, shape index: {}]   ;;  %s714_s1 = inlined_call_operand.vmem [shape: f32[16,128], index: 1, kind: input, shape index: {}]   ;;  %s715_s2 = inlined_call_operand.vmem [shape: f32[32,128], index: 2, kind: input, shape index: {}]   ;;  %s716_s3 = inlined_call_operand.hbm [shape: f32[2,32,128], index: 3, kind: output, shape index: {}]  }
   0x1   :  { %719 = sst [smem:[#allocation7_spill]] %s714_s1 }
   0x2   :  { %8 = vsyncpa [#allocation3], 0 }
   0x3   :  { %10 = vsyncpa [#allocation3 + $0x1], 0  ;;  %s584_s12 = smov 0   ;;  %s586_s13 = smov 0  }
   0x4   :  { %s588_s14 = smov 0   ;;  %s590_s15 = smov 0  }
   0x5   :  { %s592_s16 = smov 0   ;;  %s594_s17 = smov 0  }
   0x6   :  { %s596_s18 = smov 0   ;;  %s598_s19 = smov 0  }
   0x7 LB: > { %s372_s20 = sadd.s32 4294967295, %s560_s19   ;;  %s373_s21 = sadd.s32 4294967294, %s560_s19   ;;  %s560_s19 = sphi %s598_s19, %s16_s19   ;;  %s556_s18 = sphi %s596_s18, %s733_s18   ;;  %s552_s17 = sphi %s594_s17, %s732_s17   ;;  %s548_s16 = sphi %s592_s16, %s731_s16   ;;  %s544_s15 = sphi %s590_s15, %s730_s15   ;;  %s540_s14 = sphi %s588_s14, %s729_s14   ;;  %s536_s13 = sphi %s586_s13, %s728_s13   ;;  %s532_s12 = sphi %s584_s12, %s727_s12  }
   0x8   : > { %s25_s22 = sadd.s32 1, %s552_s17  ;;  %s28_s23 = sadd.s32 1, %s556_s18 }
   0x9   : > { %p26_p0 = scmp.ge.s32.totalorder %s25_s22, 2  ;;  %p122_p1 = scmp.ne.s32.totalorder %s540_s14, %s536_s13 }
   0xa   : > { %p123_p2 = scmp.eq.s32.totalorder %s372_s20, 3  ;;  %p128_p5 = scmp.ne.s32.totalorder %s536_s13, %s532_s12 }
   0xb   : > { %s735_s22 = smov (%p26_p0, %s25_s22), 0  ;;  %s737_s23 = smov (!%p26_p0, %s28_s23), %s556_s18 }
   0xc   : > { %720 = sst [smem:[#allocation5_spill]] %s735_s22  ;;  %s107_s24 = ssub.s32 %s552_s17, %s735_s22 }
   0xd   : > { %p635_p3 = por %p123_p2, %p122_p1  ;;  %p30_p4 = scmp.ge.s32.totalorder %s737_s23, 2 }
   0xe   : > { %p129_p6 = scmp.eq.s32.totalorder %s373_s21, 3  ;;  %p376_p7 = scmp.ge.s32.totalorder %s560_s19, 1 }
   0xf   : > { %s739_s23 = smov (%p30_p4, %s737_s23), 0  ;;  %p172_p9 = scmp.lt.s32.totalorder %s560_s19, 5 }
  0x10   : > { %722 = sst [smem:[#allocation6_spill]] %s739_s23  ;;  %p644_p8 = por %p129_p6, %p128_p5 }
  0x11   : > { %s108_s27 = ssub.s32 %s556_s18, %s739_s23  ;;  %s112_s28 = sadd.s32 1, %s540_s14 }
  0x12   : > { %s109_s29 = sor.u32 %s108_s27, %s107_s24  ;;  %p173_p10 = pnand %p376_p7, %p172_p9 }
  0x13   : > { %p110_p11 = scmp.eq.s32.totalorder %s109_s29, 0  ;;  %s724_s1 = sld [smem:[#allocation7_spill]] (!%p173_p10) }
  0x14   : > { %176 = sbr.rel (%p173_p10) target bundleno = 165 (0xa5), region = 32  ;;  %s378_s8 = sshll.u32 (!%p173_p10), %s548_s16, 1 }
  0x15   : > { %s653_s30 = scalar_select %p110_p11, %s540_s14, %s112_s28  }
  0x16   : > { %p206_p12 = scmp.lt.s32.totalorder (!%p173_p10), %s544_s15, 1  ;;  %p208_p13 = scmp.lt.s32.totalorder (!%p173_p10), %s378_s8, 3 }
  0x17   : > { %s387_s16 = sshll.u32 (!%p173_p10), %s544_s15, 2  ;;  %s202_s4 = sand.u32 (!%p173_p10), 1, %s536_s13  }
  0x18   : > { %s272_s29 = sadd.s32 (!%p173_p10), %s387_s16, %s378_s8  ;;  %s377_s6 = sshll.u32 (!%p173_p10), %s202_s4, 4 }
  0x19   : > { %v225_v0 = vld [vmem:[%s724_s1 + $0x8] sm:$0xff]  ;;  %v224_v1 = vld [vmem:[%s724_s1] sm:$0xff]  ;;  %s207_s9 = scalar_select %p206_p12, %s544_s15, 1  ;;  %vm228_vm0 = vcmask 130048  }
  0x1a   : > { %249 = vmatpush.msra.mxu0 %v225_v0  ;;  %391 = vmatpush.msra.mxu1 %v225_v0  ;;  %s209_s10 = scalar_select %p208_p13, %s378_s8, 3 }
  0x1b   : > { %s379_s11 = sshll.u32 %s207_s9, 2  ;;  %s388_s5 = sshll.u32 %s272_s29, 3 }
  0x1c   : > { %250 = vmatpush.msra.mxu0 %v224_v1  ;;  %392 = vmatpush.msra.mxu1 %v224_v1  ;;  %s211_s20 = sadd.s32 %s379_s11, %s209_s10  ;;  %s382_s7 = sshll.u32 %s209_s10, 3 }
  0x1d   : > { %s380_s21 = sshll.u32 %s211_s20, 3  ;;  %s274_s9 = scalar_lea.hbm %s716_s3, %s388_s5 }
  0x1e   : > { %s213_s28 = scalar_lea.vmem %s713_s0, %s380_s21  ;;  %s219_s22 = scalar_lea.vmem %s715_s2, %s382_s7 }
  0x1f   : > { %v222_v2 = vld [vmem:[%s213_s28] sm:$0xff]  ;;  %v223_v3 = vld [vmem:[%s213_s28 + $0x8] sm:$0xff]  ;;  %s277_s24 = sshll.u32 %s274_s9, 4  ;;  %s204_s21 = scalar_lea.vmem [#allocation2], %s377_s6  ;;  %s278_s24 = int_to_ptr.hbm [resolvable:$true] %s277_s24 }
  0x20   : > { %383 = vmatmul.msk.f32.vlgmr.msra.gmra.mxu0 %vm228_vm0, %v222_v2  ;;  %384 = vmatmul.msk.f32.vlgmr.msra.gmra.mxu1 %vm228_vm0, %v223_v3  ;;  %v226_v4 = vld [vmem:[%s219_s22] sm:$0xff]  ;;  %s275_s27 = sshll.u32 %s204_s21, 4  ;;  %v227_v5 = vld [vmem:[%s219_s22 + $0x8] sm:$0xff]  ;;  %s261_s1 = scalar_lea.sflag [#allocation3], %s202_s4  ;;  %s276_s27 = int_to_ptr.vmem [resolvable:$true] %s275_s27 }
  0x21   : > { %s480_s15 = sshra.s32 %s278_s24, 4  ;;  %s486_s22 = scalar_lea.hbm %s716_s3, 64  ;;  %s481_s15 = int_to_ptr.hbm [resolvable:$true] %s480_s15 }
  0x22   : > { %s482_s23 = scalar_lea.hbm %s481_s15, 16  ;;  %p487_p4 = scmp.lt.s32.totalorder %s481_s15, %s716_s3 }
  0x23   : > { %p483_p0 = scmp.ne.s32.totalorder %s481_s15, %s482_s23  ;;  %p488_p5 = scmp.lt.s32.totalorder %s486_s22, %s482_s23 }
  0x25   : > { %p484_p1 = pnand %p483_p0, %p635_p3  ;;  %p489_p6 = por %p488_p5, %p487_p4 }
  0x27   : > { %p485_p2 = pneg %p484_p1 }
  0x29   : > { %p490_p7 = pnand %p489_p6, %p485_p2 }
  0x9d   : > { %v252_v6 = vpop.f32.mrf.mxu0  ;;  %v255_v7 = vpop.f32.mrf.mxu1 }
  0x9e   : > { %v253_v8 = vadd.f32 %v252_v6, %v226_v4  ;;  %v256_v9 = vadd.f32 %v255_v7, %v227_v5 }
  0xa0   : > { %258 = vst [vmem:[%s204_s21] sm:$0xff] %v253_v8 }
  0xa1   : > { %259 = vst [vmem:[%s204_s21 + $0x8] sm:$0xff] %v256_v9 }
  0xa2   : > { %493 = shalt.err (!%p490_p7)
}
  0xa3   : > { %s562_s29 = smov 128   ;;  %s563_s4 = smov 8  }
  0xa4   : > { %393 = dma.vmem_to_hbm [thread:$0]  (%p635_p3), %s276_s27, 256, %s278_s24, %s261_s1, %s562_s29, %s562_s29, %s563_s4  }
  0xa5 PF: > { %p399_p9 = scmp.ge.s32.totalorder %s560_s19, 2  ;;  %s292_s5 = sand.u32 1, %s532_s12  }
  0xa6   : > { %s293_s6 = scalar_lea.sflag [#allocation3], %s292_s5 }
  0xa7   : > { %p396_p10 = pnand %p399_p9, %p644_p8 }
  0xa9   : > { %p397_p11 = pneg %p396_p10 }
  0xab   : > { %527 = dma.done.wait (%p397_p11), %s293_s6, 256  }
  0xac   : > { %529 = vsyncadd (%p397_p11), %s293_s6, 4294967040  ;;  %s16_s19 = sadd.s32 1, %s560_s19   ;;  %s725_s25 = sld [smem:[#allocation5_spill]] }
  0xad   : > { %p13_p12 = scmp.ge.s32.totalorder %s16_s19, 6   ;;  %s726_s7 = sld [smem:[#allocation6_spill]] }
  0xae   : > { %s727_s12 = smov %s536_s13  ;;  %s728_s13 = smov %s540_s14 }
  0xaf   : > { %s729_s14 = smov %s653_s30  ;;  %s730_s15 = smov %s552_s17 }
  0xb0   : > { %s731_s16 = smov %s556_s18  ;;  %15 = sbr.rel (!%p13_p12) target bundleno = 7 (0x7), region = 70 }
  0xb2   : > { %s732_s17 = smov %s725_s25 }
  0xb3   : > { %s733_s18 = smov %s726_s7 }
  0xb5   :  { %299 = vsyncpa [#allocation3], 1 }
  0xb6   :  { %301 = vsyncpa [#allocation3 + $0x1], 1 }

// kernel: tpu_custom_call.1
= control target key start
LH: loop header
LB: loop body
LE: loop exit
PB: predicated region body
PF: predicated region fallthrough
CT: control target
= control target key end

     0   :  { %s713_s0 = inlined_call_operand.vmem [shape: f32[2,32,16], index: 0, kind: input, shape index: {}]   ;;  %s714_s1 = inlined_call_operand.vmem [shape: f32[16,128], index: 1, kind: input, shape index: {}]   ;;  %s715_s2 = inlined_call_operand.vmem [shape: f32[32,128], index: 2, kind: input, shape index: {}]   ;;  %s716_s3 = inlined_call_operand.hbm [shape: f32[2,32,128], index: 3, kind: output, shape index: {}]  }
   0x1   :  { %719 = sst [smem:[#allocation7_spill]] %s714_s1 }
   0x2   :  { %8 = vsyncpa [#allocation3], 0 }
   0x3   :  { %10 = vsyncpa [#allocation3 + $0x1], 0  ;;  %s584_s12 = smov 0   ;;  %s586_s13 = smov 0  }
   0x4   :  { %s588_s14 = smov 0   ;;  %s590_s15 = smov 0  }
   0x5   :  { %s592_s16 = smov 0   ;;  %s594_s17 = smov 0  }
   0x6   :  { %s596_s18 = smov 0   ;;  %s598_s19 = smov 0  }
   0x7 LB: > { %s372_s20 = sadd.s32 4294967295, %s560_s19   ;;  %s373_s21 = sadd.s32 4294967294, %s560_s19   ;;  %s560_s19 = sphi %s598_s19, %s16_s19   ;;  %s556_s18 = sphi %s596_s18, %s733_s18   ;;  %s552_s17 = sphi %s594_s17, %s732_s17   ;;  %s548_s16 = sphi %s592_s16, %s731_s16   ;;  %s544_s15 = sphi %s590_s15, %s730_s15   ;;  %s540_s14 = sphi %s588_s14, %s729_s14   ;;  %s536_s13 = sphi %s586_s13, %s728_s13   ;;  %s532_s12 = sphi %s584_s12, %s727_s12  }
   0x8   : > { %s25_s22 = sadd.s32 1, %s552_s17  ;;  %s28_s23 = sadd.s32 1, %s556_s18 }
   0x9   : > { %p26_p0 = scmp.ge.s32.totalorder %s25_s22, 2  ;;  %p122_p1 = scmp.ne.s32.totalorder %s540_s14, %s536_s13 }
   0xa   : > { %p123_p2 = scmp.eq.s32.totalorder %s372_s20, 3  ;;  %p128_p5 = scmp.ne.s32.totalorder %s536_s13, %s532_s12 }
   0xb   : > { %s735_s22 = smov (%p26_p0, %s25_s22), 0  ;;  %s737_s23 = smov (!%p26_p0, %s28_s23), %s556_s18 }
   0xc   : > { %720 = sst [smem:[#allocation5_spill]] %s735_s22  ;;  %s107_s24 = ssub.s32 %s552_s17, %s735_s22 }
   0xd   : > { %p635_p3 = por %p123_p2, %p122_p1  ;;  %p30_p4 = scmp.ge.s32.totalorder %s737_s23, 2 }
   0xe   : > { %p129_p6 = scmp.eq.s32.totalorder %s373_s21, 3  ;;  %p376_p7 = scmp.ge.s32.totalorder %s560_s19, 1 }
   0xf   : > { %s739_s23 = smov (%p30_p4, %s737_s23), 0  ;;  %p172_p9 = scmp.lt.s32.totalorder %s560_s19, 5 }
  0x10   : > { %722 = sst [smem:[#allocation6_spill]] %s739_s23  ;;  %p644_p8 = por %p129_p6, %p128_p5 }
  0x11   : > { %s108_s27 = ssub.s32 %s556_s18, %s739_s23  ;;  %s112_s28 = sadd.s32 1, %s540_s14 }
  0x12   : > { %s109_s29 = sor.u32 %s108_s27, %s107_s24  ;;  %p173_p10 = pnand %p376_p7, %p172_p9 }
  0x13   : > { %p110_p11 = scmp.eq.s32.totalorder %s109_s29, 0  ;;  %s724_s1 = sld [smem:[#allocation7_spill]] (!%p173_p10) }
  0x14   : > { %176 = sbr.rel (%p173_p10) target bundleno = 165 (0xa5), region = 32  ;;  %s378_s8 = sshll.u32 (!%p173_p10), %s548_s16, 1 }
  0x15   : > { %s653_s30 = scalar_select %p110_p11, %s540_s14, %s112_s28  }
  0x16   : > { %p206_p12 = scmp.lt.s32.totalorder (!%p173_p10), %s544_s15, 1  ;;  %p208_p13 = scmp.lt.s32.totalorder (!%p173_p10), %s378_s8, 3 }
  0x17   : > { %s387_s16 = sshll.u32 (!%p173_p10), %s544_s15, 2  ;;  %s202_s4 = sand.u32 (!%p173_p10), 1, %s536_s13  }
  0x18   : > { %s272_s29 = sadd.s32 (!%p173_p10), %s387_s16, %s378_s8  ;;  %s377_s6 = sshll.u32 (!%p173_p10), %s202_s4, 4 }
  0x19   : > { %v225_v0 = vld [vmem:[%s724_s1 + $0x8] sm:$0xff]  ;;  %v224_v1 = vld [vmem:[%s724_s1] sm:$0xff]  ;;  %s207_s9 = scalar_select %p206_p12, %s544_s15, 1  ;;  %vm228_vm0 = vcmask 130048  }
  0x1a   : > { %249 = vmatpush.msra.mxu0 %v225_v0  ;;  %391 = vmatpush.msra.mxu1 %v225_v0  ;;  %s209_s10 = scalar_select %p208_p13, %s378_s8, 3 }
  0x1b   : > { %s379_s11 = sshll.u32 %s207_s9, 2  ;;  %s388_s5 = sshll.u32 %s272_s29, 3 }
  0x1c   : > { %250 = vmatpush.msra.mxu0 %v224_v1  ;;  %392 = vmatpush.msra.mxu1 %v224_v1  ;;  %s211_s20 = sadd.s32 %s379_s11, %s209_s10  ;;  %s382_s7 = sshll.u32 %s209_s10, 3 }
  0x1d   : > { %s380_s21 = sshll.u32 %s211_s20, 3  ;;  %s274_s9 = scalar_lea.hbm %s716_s3, %s388_s5 }
  0x1e   : > { %s213_s28 = scalar_lea.vmem %s713_s0, %s380_s21  ;;  %s219_s22 = scalar_lea.vmem %s715_s2, %s382_s7 }
  0x1f   : > { %v222_v2 = vld [vmem:[%s213_s28] sm:$0xff]  ;;  %v223_v3 = vld [vmem:[%s213_s28 + $0x8] sm:$0xff]  ;;  %s277_s24 = sshll.u32 %s274_s9, 4  ;;  %s204_s21 = scalar_lea.vmem [#allocation2], %s377_s6  ;;  %s278_s24 = int_to_ptr.hbm [resolvable:$true] %s277_s24 }
  0x20   : > { %383 = vmatmul.msk.f32.vlgmr.msra.gmra.mxu0 %vm228_vm0, %v222_v2  ;;  %384 = vmatmul.msk.f32.vlgmr.msra.gmra.mxu1 %vm228_vm0, %v223_v3  ;;  %v226_v4 = vld [vmem:[%s219_s22] sm:$0xff]  ;;  %s275_s27 = sshll.u32 %s204_s21, 4  ;;  %v227_v5 = vld [vmem:[%s219_s22 + $0x8] sm:$0xff]  ;;  %s261_s1 = scalar_lea.sflag [#allocation3], %s202_s4  ;;  %s276_s27 = int_to_ptr.vmem [resolvable:$true] %s275_s27 }
  0x21   : > { %s480_s15 = sshra.s32 %s278_s24, 4  ;;  %s486_s22 = scalar_lea.hbm %s716_s3, 64  ;;  %s481_s15 = int_to_ptr.hbm [resolvable:$true] %s480_s15 }
  0x22   : > { %s482_s23 = scalar_lea.hbm %s481_s15, 16  ;;  %p487_p4 = scmp.lt.s32.totalorder %s481_s15, %s716_s3 }
  0x23   : > { %p483_p0 = scmp.ne.s32.totalorder %s481_s15, %s482_s23  ;;  %p488_p5 = scmp.lt.s32.totalorder %s486_s22, %s482_s23 }
  0x25   : > { %p484_p1 = pnand %p483_p0, %p635_p3  ;;  %p489_p6 = por %p488_p5, %p487_p4 }
  0x27   : > { %p485_p2 = pneg %p484_p1 }
  0x29   : > { %p490_p7 = pnand %p489_p6, %p485_p2 }
  0x9d   : > { %v252_v6 = vpop.f32.mrf.mxu0  ;;  %v255_v7 = vpop.f32.mrf.mxu1 }
  0x9e   : > { %v253_v8 = vadd.f32 %v252_v6, %v226_v4  ;;  %v256_v9 = vadd.f32 %v255_v7, %v227_v5 }
  0xa0   : > { %258 = vst [vmem:[%s204_s21] sm:$0xff] %v253_v8 }
  0xa1   : > { %259 = vst [vmem:[%s204_s21 + $0x8] sm:$0xff] %v256_v9 }
  0xa2   : > { %493 = shalt.err (!%p490_p7)
}
  0xa3   : > { %s562_s29 = smov 128   ;;  %s563_s4 = smov 8  }
  0xa4   : > { %393 = dma.vmem_to_hbm [thread:$0]  (%p635_p3), %s276_s27, 256, %s278_s24, %s261_s1, %s562_s29, %s562_s29, %s563_s4  }
  0xa5 PF: > { %p399_p9 = scmp.ge.s32.totalorder %s560_s19, 2  ;;  %s292_s5 = sand.u32 1, %s532_s12  }
  0xa6   : > { %s293_s6 = scalar_lea.sflag [#allocation3], %s292_s5 }
  0xa7   : > { %p396_p10 = pnand %p399_p9, %p644_p8 }
  0xa9   : > { %p397_p11 = pneg %p396_p10 }
  0xab   : > { %527 = dma.done.wait (%p397_p11), %s293_s6, 256  }
  0xac   : > { %529 = vsyncadd (%p397_p11), %s293_s6, 4294967040  ;;  %s16_s19 = sadd.s32 1, %s560_s19   ;;  %s725_s25 = sld [smem:[#allocation5_spill]] }
  0xad   : > { %p13_p12 = scmp.ge.s32.totalorder %s16_s19, 6   ;;  %s726_s7 = sld [smem:[#allocation6_spill]] }
  0xae   : > { %s727_s12 = smov %s536_s13  ;;  %s728_s13 = smov %s540_s14 }
  0xaf   : > { %s729_s14 = smov %s653_s30  ;;  %s730_s15 = smov %s552_s17 }
  0xb0   : > { %s731_s16 = smov %s556_s18  ;;  %15 = sbr.rel (!%p13_p12) target bundleno = 7 (0x7), region = 70 }
  0xb2   : > { %s732_s17 = smov %s725_s25 }
  0xb3   : > { %s733_s18 = smov %s726_s7 }
  0xb5   :  { %299 = vsyncpa [#allocation3], 1 }
  0xb6   :  { %301 = vsyncpa [#allocation3 + $0x1], 1 }

</bundles_post_ra>
